<compile_context>
chip_gen: v7x
topology: tpu7x:2x2x1
jax: 0.10.0
libtpu: 0.0.40
codegen_flags: <defaults>
</compile_context>

<pallas_src>
import jax
import jax.numpy as jnp
from jax.experimental import pallas as pl
from jax.experimental.pallas import tpu as pltpu


# ---------------------------------------------------------------------------
# Kernels
# ---------------------------------------------------------------------------

def rl_agent_kernel_mxu(x_ref, w1_ref, b1_ref, w2_ref, b2_ref, out_ref):
    """Batched-path kernel: both layers on the MXU, f32 accumulation.

    x_ref:  [bb, 5]    w1_ref: [5, 64]   b1_ref: [1, 64]
    w2_ref: [64, 16]   b2_ref: [1, 16]   out_ref:[bb, 16]
    """
    # Layer 1 on the MXU (Mosaic pads K=5 internally; MXU has huge slack and
    # this frees the VALU/XLU slots that the old per-column broadcasts used).
    h = jnp.dot(x_ref[...], w1_ref[...], preferred_element_type=jnp.float32)
    h = jnp.maximum(h + b1_ref[...].astype(jnp.float32), 0.0)   # f32 bias+ReLU
    # Layer 2 on the MXU, f32 accumulate (inputs may be bf16 on v6e/v7x).
    y = jnp.dot(h.astype(w2_ref.dtype), w2_ref[...],
                preferred_element_type=jnp.float32)
    out_ref[...] = (y + b2_ref[...].astype(jnp.float32)).astype(out_ref.dtype)


def rl_agent_kernel_vpu(x_ref, w1_ref, b1_ref, w2_ref, b2_ref, out_ref):
    """Tiny-batch kernel: layer 1 as 5 unrolled VPU broadcast-FMAs.

    At B ~ O(10) rows the MXU push/pop latency dominates a K=5 matmul, so the
    first layer stays on the VPU; layer 2 (64->16) still uses the MXU.
    """
    x = x_ref[...].astype(jnp.float32)
    w1 = w1_ref[...].astype(jnp.float32)
    k_dim = x.shape[1]                                  # 5, static
    h = x[:, 0:1] * w1[0:1, :]
    for k in range(1, k_dim):
        h = h + x[:, k:k + 1] * w1[k:k + 1, :]
    h = jnp.maximum(h + b1_ref[...].astype(jnp.float32), 0.0)
    y = jnp.dot(h.astype(w2_ref.dtype), w2_ref[...],
                preferred_element_type=jnp.float32)
    out_ref[...] = (y + b2_ref[...].astype(jnp.float32)).astype(out_ref.dtype)


# ---------------------------------------------------------------------------
# One-time parameter prep (kept out of the per-call path)
# ---------------------------------------------------------------------------

def prepare_params(w1, b1, w2, b2, dtype=jnp.float32):
    """PyTorch nn.Linear stores W as [out, in]; transpose to [in, out].

    `dtype=jnp.bfloat16` is recommended on v6e/v7x (bf16-native MXU/VALU,
    halves HBM traffic on the mem-bound batched path); keep f32 on v5e.
    """
    w1_t = jnp.asarray(w1, dtype).T                 # [5, 64]
    b1_r = jnp.asarray(b1, dtype).reshape(1, -1)    # [1, 64]
    w2_t = jnp.asarray(w2, dtype).T                 # [64, 16]
    b2_r = jnp.asarray(b2, dtype).reshape(1, -1)    # [1, 16]
    return (w1_t, b1_r, w2_t, b2_r)


def _cost_estimate(batch, in_size, hidden, out_size, itemsize):
    # Honest (unpadded) numbers so XLA's scheduler isn't misled.
    flops = 2 * batch * (in_size * hidden + hidden * out_size)
    bytes_accessed = itemsize * (
        batch * in_size + batch * out_size                       # activations
        + in_size * hidden + hidden + hidden * out_size + out_size)  # params
    return pl.CostEstimate(flops=flops, transcendentals=0,
                           bytes_accessed=bytes_accessed)


def _round_up(n, m):
    return ((n + m - 1) // m) * m


def _pick_block_b(B, min_steps=4, cap=4096):
    """Row-tile size for the batched path.

    Big tiles amortize the ~0.35 us per-grid-step overhead and give the DMA
    engine long contiguous transfers, but:
      * keep >= min_steps grid iterations so the "parallel" batch axis gives
        v7x's second TensorCore work (1-step grids serialize onto one TC);
      * cap at 4096 rows: x/out tiles lane-pad to 128 lanes in VMEM, so
        double-buffered f32 tiles cost ~8 MiB -- under v5e's 16 MiB scoped
        default and far under v6e/v7x's 32 MiB.
    """
    target = pl.cdiv(B, min_steps)
    return max(8, min(cap, _round_up(target, 8)))


# ---------------------------------------------------------------------------
# Forward wrapper
# ---------------------------------------------------------------------------

def rl_agent_forward(x, params, *, tiny_batch_threshold=512, block_b=None):
    """x: [B, 5] -> [B, 16] in the parameter dtype."""
    w1_t, b1_r, w2_t, b2_r = params
    B, in_size = x.shape
    hidden = w1_t.shape[1]
    out_size = w2_t.shape[1]
    out_dtype = w2_t.dtype
    if x.dtype != out_dtype:
        x = x.astype(out_dtype)
    cost = _cost_estimate(B, in_size, hidden, out_size,
                          jnp.dtype(out_dtype).itemsize)

    if B <= tiny_batch_threshold:
        # Grid-less single invocation: no software-pipeline prologue/epilogue.
        # TODO(synk): at B ~ O(10) this path is dispatch + ~9 KB weight-DMA
        # latency bound; batch multiple environment steps per call at the
        # caller rather than tuning the kernel body further.
        return pl.pallas_call(
            rl_agent_kernel_vpu,
            out_shape=jax.ShapeDtypeStruct((B, out_size), out_dtype),
            in_specs=[pl.BlockSpec(memory_space=pltpu.MemorySpace.VMEM)] * 5,
            out_specs=pl.BlockSpec(memory_space=pltpu.MemorySpace.VMEM),
            cost_estimate=cost,
        )(x, w1_t, b1_r, w2_t, b2_r)

    bb = block_b if block_b is not None else _pick_block_b(B)
    grid = (pl.cdiv(B, bb),)
    return pl.pallas_call(
        rl_agent_kernel_mxu,
        out_shape=jax.ShapeDtypeStruct((B, out_size), out_dtype),
        grid_spec=pltpu.PrefetchScalarGridSpec(
            num_scalar_prefetch=0,
            grid=grid,
            in_specs=[
                pl.BlockSpec((bb, in_size), lambda i: (i, 0)),
                pl.BlockSpec(w1_t.shape, lambda i: (0, 0)),
                pl.BlockSpec(b1_r.shape, lambda i: (0, 0)),
                pl.BlockSpec(w2_t.shape, lambda i: (0, 0)),
                pl.BlockSpec(b2_r.shape, lambda i: (0, 0)),
            ],
            out_specs=pl.BlockSpec((bb, out_size), lambda i: (i, 0)),
        ),
        compiler_params=pltpu.CompilerParams(
            dimension_semantics=("parallel",)),
        cost_estimate=cost,
    )(x, w1_t, b1_r, w2_t, b2_r)


def reference_forward(x, w1, b1, w2, b2):
    h = jnp.maximum(x @ w1.T + b1, 0.0)
    return h @ w2.T + b2


# ---------------------------------------------------------------------------
# Self-test
# ---------------------------------------------------------------------------

if __name__ == "__main__":
    key = jax.random.PRNGKey(0)
    k_x, k_w1, k_b1, k_w2, k_b2, k_xb = jax.random.split(key, 6)

    B, in_size, hidden, out_size = 8, 5, 64, 16

    # Deterministic synthetic parameters (not a checkpoint load).
    x = jax.random.normal(k_x, (B, in_size), dtype=jnp.float32)
    w1 = jax.random.normal(k_w1, (hidden, in_size), dtype=jnp.float32) * 0.1
    b1 = jax.random.normal(k_b1, (hidden,), dtype=jnp.float32) * 0.1
    w2 = jax.random.normal(k_w2, (out_size, hidden), dtype=jnp.float32) * 0.1
    b2 = jax.random.normal(k_b2, (out_size,), dtype=jnp.float32) * 0.1

    # --- f32, tiny-batch (grid-less, VPU layer-1) path -----------------------
    params_f32 = prepare_params(w1, b1, w2, b2, dtype=jnp.float32)
    out = rl_agent_forward(x, params_f32)
    jax.block_until_ready(out)
    ref = reference_forward(x, w1, b1, w2, b2)
    assert out.shape == (B, out_size)
    assert jnp.allclose(out, ref, atol=1e-5, rtol=1e-5), "tiny-batch mismatch"

    # --- f32, batched (row-tiled, "parallel" axis, MXU both layers) path -----
    Bb = 2048
    xb = jax.random.normal(k_xb, (Bb, in_size), dtype=jnp.float32)
    outb = rl_agent_forward(xb, params_f32)            # auto block_b=512, 4 steps
    jax.block_until_ready(outb)
    refb = reference_forward(xb, w1, b1, w2, b2)
    assert outb.shape == (Bb, out_size)
    assert jnp.allclose(outb, refb, atol=1e-4, rtol=1e-4), "batched mismatch"

    # --- bf16 IO (v6e/v7x recommendation), f32 accumulation ------------------
    params_bf16 = prepare_params(w1, b1, w2, b2, dtype=jnp.bfloat16)
    outb16 = rl_agent_forward(xb, params_bf16)
    jax.block_until_ready(outb16)
    # Reference on bf16-rounded inputs/params (isolates accumulation error).
    refb16 = reference_forward(
        xb.astype(jnp.bfloat16).astype(jnp.float32),
        jnp.asarray(w1, jnp.bfloat16).astype(jnp.float32),
        jnp.asarray(b1, jnp.bfloat16).astype(jnp.float32),
        jnp.asarray(w2, jnp.bfloat16).astype(jnp.float32),
        jnp.asarray(b2, jnp.bfloat16).astype(jnp.float32))
    assert outb16.shape == (Bb, out_size)
    assert jnp.allclose(outb16.astype(jnp.float32), refb16,
                        atol=5e-2, rtol=5e-2), "bf16 batched mismatch"

    # TODO(synk): Adam optimizer / MSELoss / train_step are training-side state,
    # not part of the forward pass, and are intentionally not ported.
    print("KERNEL_OK")
</pallas_src>

<mosaic_0001>
module attributes {stable_mosaic.version = 11 : i64} {
  func.func @rl_agent_kernel_vpu(%arg0: memref<8x5xf32, #tpu.memory_space<vmem>>, %arg1: memref<5x64xf32, #tpu.memory_space<vmem>>, %arg2: memref<1x64xf32, #tpu.memory_space<vmem>>, %arg3: memref<64x16xf32, #tpu.memory_space<vmem>>, %arg4: memref<1x16xf32, #tpu.memory_space<vmem>>, %arg5: memref<8x16xf32, #tpu.memory_space<vmem>>) attributes {dimension_semantics = [], scalar_prefetch = 0 : i64, scratch_operands = 0 : i64, tpu.core_type = #tpu.core_type<tc>} {
    %c0 = arith.constant 0 : index
    %c0_0 = arith.constant 0 : index
    %0 = vector.load %arg0[%c0, %c0_0] : memref<8x5xf32, #tpu.memory_space<vmem>>, vector<8x5xf32>
    %c0_1 = arith.constant 0 : index
    %c0_2 = arith.constant 0 : index
    %1 = vector.load %arg1[%c0_1, %c0_2] : memref<5x64xf32, #tpu.memory_space<vmem>>, vector<5x64xf32>
    %2 = vector.extract_strided_slice %0 {offsets = [0, 0], sizes = [8, 1], strides = [1, 1]} : vector<8x5xf32> to vector<8x1xf32>
    %3 = vector.extract_strided_slice %1 {offsets = [0, 0], sizes = [1, 64], strides = [1, 1]} : vector<5x64xf32> to vector<1x64xf32>
    %4 = vector.broadcast %2 : vector<8x1xf32> to vector<8x64xf32>
    %5 = vector.broadcast %3 : vector<1x64xf32> to vector<8x64xf32>
    %6 = arith.mulf %4, %5 : vector<8x64xf32>
    %7 = vector.extract_strided_slice %0 {offsets = [0, 1], sizes = [8, 1], strides = [1, 1]} : vector<8x5xf32> to vector<8x1xf32>
    %8 = vector.extract_strided_slice %1 {offsets = [1, 0], sizes = [1, 64], strides = [1, 1]} : vector<5x64xf32> to vector<1x64xf32>
    %9 = vector.broadcast %7 : vector<8x1xf32> to vector<8x64xf32>
    %10 = vector.broadcast %8 : vector<1x64xf32> to vector<8x64xf32>
    %11 = arith.mulf %9, %10 : vector<8x64xf32>
    %12 = arith.addf %6, %11 : vector<8x64xf32>
    %13 = vector.extract_strided_slice %0 {offsets = [0, 2], sizes = [8, 1], strides = [1, 1]} : vector<8x5xf32> to vector<8x1xf32>
    %14 = vector.extract_strided_slice %1 {offsets = [2, 0], sizes = [1, 64], strides = [1, 1]} : vector<5x64xf32> to vector<1x64xf32>
    %15 = vector.broadcast %13 : vector<8x1xf32> to vector<8x64xf32>
    %16 = vector.broadcast %14 : vector<1x64xf32> to vector<8x64xf32>
    %17 = arith.mulf %15, %16 : vector<8x64xf32>
    %18 = arith.addf %12, %17 : vector<8x64xf32>
    %19 = vector.extract_strided_slice %0 {offsets = [0, 3], sizes = [8, 1], strides = [1, 1]} : vector<8x5xf32> to vector<8x1xf32>
    %20 = vector.extract_strided_slice %1 {offsets = [3, 0], sizes = [1, 64], strides = [1, 1]} : vector<5x64xf32> to vector<1x64xf32>
    %21 = vector.broadcast %19 : vector<8x1xf32> to vector<8x64xf32>
    %22 = vector.broadcast %20 : vector<1x64xf32> to vector<8x64xf32>
    %23 = arith.mulf %21, %22 : vector<8x64xf32>
    %24 = arith.addf %18, %23 : vector<8x64xf32>
    %25 = vector.extract_strided_slice %0 {offsets = [0, 4], sizes = [8, 1], strides = [1, 1]} : vector<8x5xf32> to vector<8x1xf32>
    %26 = vector.extract_strided_slice %1 {offsets = [4, 0], sizes = [1, 64], strides = [1, 1]} : vector<5x64xf32> to vector<1x64xf32>
    %27 = vector.broadcast %25 : vector<8x1xf32> to vector<8x64xf32>
    %28 = vector.broadcast %26 : vector<1x64xf32> to vector<8x64xf32>
    %29 = arith.mulf %27, %28 : vector<8x64xf32>
    %30 = arith.addf %24, %29 : vector<8x64xf32>
    %c0_3 = arith.constant 0 : index
    %c0_4 = arith.constant 0 : index
    %31 = vector.load %arg2[%c0_3, %c0_4] : memref<1x64xf32, #tpu.memory_space<vmem>>, vector<1x64xf32>
    %32 = vector.broadcast %31 : vector<1x64xf32> to vector<8x64xf32>
    %33 = arith.addf %30, %32 : vector<8x64xf32>
    %cst = arith.constant 0.000000e+00 : f32
    %34 = vector.broadcast %cst : f32 to vector<8x64xf32>
    %35 = arith.maximumf %33, %34 : vector<8x64xf32>
    %c0_5 = arith.constant 0 : index
    %c0_6 = arith.constant 0 : index
    %36 = vector.load %arg3[%c0_5, %c0_6] : memref<64x16xf32, #tpu.memory_space<vmem>>, vector<64x16xf32>
    %cst_7 = arith.constant dense<0.000000e+00> : vector<8x16xf32>
    %37 = tpu.matmul %35, %36, %cst_7 {dimension_numbers = #tpu.dot_dimension_numbers<[1], [0], [0], [1], [0, 0, 1, 1], [], []>} : vector<8x64xf32>, vector<64x16xf32>, vector<8x16xf32> -> vector<8x16xf32>
    %c0_8 = arith.constant 0 : index
    %c0_9 = arith.constant 0 : index
    %38 = vector.load %arg4[%c0_8, %c0_9] : memref<1x16xf32, #tpu.memory_space<vmem>>, vector<1x16xf32>
    %39 = vector.broadcast %38 : vector<1x16xf32> to vector<8x16xf32>
    %40 = arith.addf %37, %39 : vector<8x16xf32>
    %c0_10 = arith.constant 0 : index
    %c0_11 = arith.constant 0 : index
    %41 = vector.load %arg5[%c0_10, %c0_11] : memref<8x16xf32, #tpu.memory_space<vmem>>, vector<8x16xf32>
    tpu.vector_store %arg5[%c0_10, %c0_11], %40 {strides = array<i32>} : memref<8x16xf32, #tpu.memory_space<vmem>>, vector<8x16xf32>,
    return
  }
}

</mosaic_0001>

<bundles_post_ra>
// kernel: tpu_custom_call.1
= control target key start
LH: loop header
LB: loop body
LE: loop exit
PB: predicated region body
PF: predicated region fallthrough
CT: control target
= control target key end

     0   :  { %v269_v1 = vmov 0   ;;  %v270_v2 = vmov 2   ;;  %s356_s0 = inlined_call_operand.vmem [shape: f32[8,5], index: 0, kind: input, shape index: {}]   ;;  %s357_s1 = inlined_call_operand.vmem [shape: f32[5,64], index: 1, kind: input, shape index: {}]   ;;  %s358_s2 = inlined_call_operand.vmem [shape: f32[1,64], index: 2, kind: input, shape index: {}]   ;;  %s359_s3 = inlined_call_operand.vmem [shape: f32[64,16], index: 3, kind: input, shape index: {}]   ;;  %s360_s4 = inlined_call_operand.vmem [shape: f32[1,16], index: 4, kind: input, shape index: {}]   ;;  %s361_s5 = inlined_call_operand.hbm [shape: f32[8,16], index: 5, kind: output, shape index: {}]  }
   0x1   :  { %v21_v0 = vld [vmem:[%s356_s0] sm:$0xff]  ;;  %239 = vset.pattern.permute.xlu0 %v269_v1  ;;  %241 = vset.pattern.permute.xlu1 %v270_v2 }
   0x2   :  { %10 = vsyncpa [#allocation3], 0  ;;  %25 = vperm.xlu0 %239, %v21_v0   ;;  %44 = vperm.xlu1 %241, %v21_v0   ;;  %v82_v3 = vld [vmem:[%s359_s3] sm:$0xff]  ;;  %v83_v4 = vld [vmem:[%s359_s3 + $0x8] sm:$0xff]  ;;  %v271_v5 = vmov 0.0|0.0   ;;  %v272_v7 = vmov 1   ;;  %v28_v20 = vlaneseq }
   0x3   :  { %218 = vmatprep.subr.bf16.mxu0 %v271_v5  ;;  %v219_v6 = vpack.c.bf16 %v83_v4, %v82_v3  ;;  %v273_v8 = vmov 3   ;;  %v84_v9 = vld [vmem:[%s359_s3 + $0x10] sm:$0xff]  ;;  %v85_v10 = vld [vmem:[%s359_s3 + $0x18] sm:$0xff]  ;;  %v274_v12 = vmov 4   ;;  %v86_v13 = vld [vmem:[%s359_s3 + $0x20] sm:$0xff]  ;;  %vm275_vm0 = vmmov 0  }
   0x4   :  { %v222_v11 = vpack.c.bf16 %v85_v10, %v84_v9  ;;  %v87_v14 = vld [vmem:[%s359_s3 + $0x28] sm:$0xff]  ;;  %v88_v16 = vld [vmem:[%s359_s3 + $0x30] sm:$0xff]  ;;  %v89_v17 = vld [vmem:[%s359_s3 + $0x38] sm:$0xff]  ;;  %v276_v19 = vmov 0.0   ;;  %v29_v21 = vshrl.u32 %v28_v20, 7  ;;  %vm97_vm1 = vcmask 523264  }
   0x5   :  { %220 = vmatpush3.bf16.msra.mxu0 %v219_v6  ;;  %v225_v15 = vpack.c.bf16 %v87_v14, %v86_v13  ;;  %v228_v18 = vpack.c.bf16 %v89_v17, %v88_v16  ;;  %215 = vmatprep.mubr.msk.f32.mxu0 %vm275_vm0, %v276_v19  ;;  %v22_v24 = vld [vmem:[%s357_s1] sm:$0x1f]  ;;  %s277_s14 = smov [#allocation2]   ;;  %vm171_vm2 = vcmask 130048  }
   0x6   :  { %240 = vset.pattern.permute.xlu0 %v272_v7  ;;  %242 = vset.pattern.permute.xlu1 %v273_v8  ;;  %v30_v22 = vsub.s32 0, %v29_v21  ;;  %v39_v23 = vsub.s32 1, %v29_v21  ;;  %v49_v26 = vsub.s32 2, %v29_v21  ;;  %v59_v30 = vsub.s32 3, %v29_v21  ;;  %v187_v46 = vld [vmem:[%s358_s2] ss:$0 sm:$0xff] }
   0x7   :  { %34 = vperm.xlu0 %240, %v21_v0   ;;  %54 = vperm.xlu1 %242, %v21_v0   ;;  %v69_v31 = vsub.s32 4, %v29_v21  ;;  %v188_v50 = vld [vmem:[%s360_s4] ss:$0 sm:$0xff]  ;;  %s179_s15 = sshll.u32 %s277_s14, 4  ;;  %s180_s15 = int_to_ptr.vmem [resolvable:$true] %s179_s15 }
   0x8   :  { %221 = vmatprep.subr.bf16.mxu0 %v271_v5  ;;  %v31_v28 = vrot.slane %v22_v24, %v30_v22  ;;  %v40_v29 = vrot.slane %v22_v24, %v39_v23  ;;  %v50_v32 = vrot.slane %v22_v24, %v49_v26  ;;  %v60_v37 = vrot.slane %v22_v24, %v59_v30  ;;  %s245_s16 = scalar_lea.vmem %s180_s15, 128  ;;  %p250_p1 = scmp.lt.s32.totalorder %s180_s15, %s180_s15 }
   0x9   :  { %223 = vmatpush3.bf16.msra.mxu0 %v222_v11  ;;  %v70_v38 = vrot.slane %v22_v24, %v69_v31  ;;  %p246_p0 = scmp.ne.s32.totalorder %s180_s15, %s245_s16  ;;  %p251_p2 = scmp.lt.s32.totalorder %s245_s16, %s245_s16 }
   0xa   :  { %224 = vmatprep.subr.bf16.mxu0 %v271_v5 }
   0xb   :  { %243 = vset.pattern.permute.xlu1 %v274_v12  ;;  %244 = vset.pattern.permute.xlu0 %v274_v12  ;;  %p252_p3 = por %p251_p2, %p250_p1 }
   0xc   :  { %64 = vperm.xlu1 %243, %v21_v0  }
   0xd   :  { %226 = vmatpush3.bf16.msra.mxu0 %v225_v15  ;;  %p253_p4 = pnand %p252_p3, %p246_p0 }
   0xe   :  { %227 = vmatprep.subr.bf16.mxu0 %v271_v5 }
  0x11   :  { %229 = vmatpush3.bf16.msra.mxu0 %v228_v18 }
  0x81   :  { %v26_v25 = vpop.permute.xlu0 %25  ;;  %v45_v27 = vpop.permute.xlu1 %44 }
  0x82   :  { %v32_v35 = vmul.f32 %v31_v28, %v26_v25  ;;  %v51_v39 = vmul.f32 %v50_v32, %v45_v27 }
  0x86   :  { %v35_v33 = vpop.permute.xlu0 %34  ;;  %v55_v34 = vpop.permute.xlu1 %54 }
  0x87   :  { %v41_v36 = vmul.f32 %v40_v29, %v35_v33  ;;  %v61_v42 = vmul.f32 %v60_v37, %v55_v34 }
  0x89   :  { %v42_v40 = vadd.f32 %v41_v36, %v32_v35 }
  0x8b   :  { %v52_v41 = vadd.f32 %v51_v39, %v42_v40  ;;  %v65_v43 = vpop.permute.xlu1 %64 }
  0x8c   :  { %v71_v44 = vmul.f32 %v70_v38, %v65_v43 }
  0x8d   :  { %v62_v45 = vadd.f32 %v61_v42, %v52_v41 }
  0x8f   :  { %v72_v47 = vadd.f32 %v71_v44, %v62_v45 }
  0x91   :  { %v80_v48 = vadd.f32 %v187_v46, %v72_v47 }
  0x93   :  { %v81_v49 = vmax.f32 %v80_v48, 0.0 }
  0x95   :  { %216 = vmatmul.mubr.msk.f32.vlgmr.msra.gmra.mrb[0].mxu0 %vm97_vm1, %v81_v49 }
 0x168   :  { %v167_v51 = vpop.f32.mrb[0].mxu0 }
 0x169   :  { %v168_v52 = vadd.f32 %v188_v50, %v167_v51  ;;  %v217_v53 = vpop.f32.mrb[1].mxu0 }
 0x16b   :  { %172 = vst.msk [vmem:[#allocation2] sm:$0xff] %vm171_vm2, %v168_v52 }
 0x16c   :  { %256 = shalt.err (!%p253_p4)
}
 0x16d   :  { %s257_s18 = scalar_lea.hbm %s361_s5, 128 }
 0x16e   :  { %p258_p5 = scmp.ne.s32.totalorder %s361_s5, %s257_s18  ;;  %p261_p6 = scmp.lt.u32.totalorder %s257_s18, %s361_s5 }
 0x170   :  { %p263_p7 = pnand %p261_p6, %p258_p5 }
 0x172   :  { %266 = shalt.err (!%p263_p7)
}
 0x173   :  { %182 = dma.vmem_to_hbm [thread:$0]  %s180_s15, 128, %s361_s5, [#allocation3]  }
 0x174   :  { %267 = dma.done.wait [#allocation3], 128  }
 0x175   :  { %268 = vsyncadd [#allocation3], 4294967168 }
 0x176   :  { %186 = vsyncpa [#allocation3], 1 }

</bundles_post_ra>
